<compile_context>
chip_gen: v5e
topology: v5e:2x2
jax: 0.10.0
libtpu: 0.0.40
codegen_flags: <defaults>
</compile_context>

<pallas_src>
import functools

import jax
import jax.numpy as jnp
from jax.experimental import pallas as pl
from jax.experimental.pallas import tpu as pltpu


def _tabpfn_kernel(sep, scale, n_classes,
                   x_ref, y_ref, wx_ref, bx_ref, wy_ref, wo_ref, bo_ref,
                   out_ref):
    """Fused encoders + attention + decoder for a tile of Bt batch elements.

    Per-block shapes:
      x_ref   : (S, Bt, F)  f32  features, seq-first as delivered by HBM
      y_ref   : (Bt, S)     i32  labels, S on lanes (only rows < sep used)
      wx_ref  : (F, D)      bf16 feature-encoder weight
      bx_ref  : (1, D)      f32  feature-encoder bias
      wy_ref  : (C, D)      f32  label-encoder weight (VPU path)
      wo_ref  : (D, Cp)     bf16 decoder weight, class dim padded to Cp (=128k)
      bo_ref  : (1, Cp)     f32  decoder bias, padded
      out_ref : (E, Bt, Cp) f32  logits for eval rows, seq-first, lane-dense
    """
    S, Bt, F = x_ref.shape
    D = wx_ref.shape[1]
    Cp = wo_ref.shape[1]
    T = sep
    E = S - sep

    # ---- X arrives seq-first; rearrange to batch-major on-chip (XLU, overlaps
    #      with the pipeline) and cast to bf16 here instead of in the wrapper.
    x = jnp.transpose(x_ref[...], (1, 0, 2))                           # (Bt,S,F) f32

    # ---- Feature encoder: fold batch into sublanes -> one MXU matmul.
    h = (jnp.dot(x.reshape(Bt * S, F).astype(jnp.bfloat16), wx_ref[...],
                 preferred_element_type=jnp.float32)
         + bx_ref[...]).reshape(Bt, S, D)                              # f32

    # ---- Label encoder fused into the kv add.  For small C an unrolled VPU
    #      select/MAC beats a (Bt*T, C)@(C, D) matmul whose K dim is ~all pad.
    # NOTE: sep being a multiple of 8 keeps the sublane slices on h copy-free.
    kv_f32 = h[:, :T, :]                                               # (Bt,T,D)
    y_tr = y_ref[...][:, :T]                                           # (Bt,T) i32
    wy = wy_ref[...]                                                   # (C,D) f32
    for c in range(n_classes):
        mask = (y_tr == c).astype(jnp.float32)[:, :, None]             # (Bt,T,1)
        kv_f32 = kv_f32 + mask * wy[c:c + 1, :].reshape(1, 1, D)
    kv = kv_f32.astype(jnp.bfloat16)                                   # (Bt,T,D)

    # ---- Eval queries; softmax scale folded into q (E*D elems, not E*T).
    q = (h[:, T:, :] * scale).astype(jnp.bfloat16)                     # (Bt,E,D)

    # ---- Single-head attention: contract D of both operands (no kv transpose).
    s = jnp.einsum("bed,btd->bet", q, kv,
                   preferred_element_type=jnp.float32)                 # (Bt,E,T)
    m = jnp.max(s, axis=-1, keepdims=True)
    p = jnp.exp(s - m)
    p = p * pl.reciprocal(jnp.sum(p, axis=-1, keepdims=True), approx=True)
    attn = jnp.einsum("bet,btd->bed", p.astype(jnp.bfloat16), kv,
                      preferred_element_type=jnp.float32)               # (Bt,E,D)

    # ---- Decoder into a lane-dense (class-padded) tile, then write seq-first.
    logits = (jnp.dot(attn.reshape(Bt * E, D).astype(jnp.bfloat16), wo_ref[...],
                      preferred_element_type=jnp.float32)
              + bo_ref[...]).reshape(Bt, E, Cp)
    out_ref[...] = jnp.transpose(logits, (1, 0, 2))                     # (E,Bt,Cp)


def _round_up(n, m):
    return ((n + m - 1) // m) * m


def _vmem_capacity_bytes():
    try:
        return int(pltpu.get_tpu_info().vmem_capacity_bytes)
    except Exception:
        return 64 * 1024 * 1024   # conservative fallback (v7x per-core VMEM)


def _tile_vmem_bytes(bt, S, F, D, Cp, sep, n_classes):
    """Rough VMEM footprint of one grid step (tiles + live intermediates)."""
    E, T = S - sep, sep
    sub = lambda n: _round_up(max(int(n), 1), 8)
    lane = lambda n: _round_up(max(int(n), 1), 128)
    # Pipelined HBM<->VMEM buffers (x2 double buffering each).
    io = 2 * (S * sub(bt) * lane(F) * 4          # X tile, f32
              + sub(bt) * lane(S) * 4            # y tile, i32
              + E * sub(bt) * lane(Cp) * 4)      # out tile, f32
    # Grid-invariant weights (counted x2, conservative).
    w = 2 * (sub(F) * lane(D) * 2 + sub(1) * lane(D) * 4
             + sub(n_classes) * lane(D) * 4
             + sub(D) * lane(Cp) * 2 + sub(1) * lane(Cp) * 4)
    # Live in-kernel intermediates (single copy each).
    inter = (bt * sub(S) * lane(F) * 4           # transposed X
             + bt * sub(S) * lane(D) * 4         # h (f32)
             + bt * sub(T) * lane(D) * 6         # kv f32 + bf16
             + bt * sub(E) * lane(D) * 2         # q (bf16)
             + 2 * bt * sub(E) * lane(T) * 4     # scores / probs (f32)
             + bt * sub(E) * lane(D) * 4         # attn (f32)
             + 2 * bt * sub(E) * lane(Cp) * 4)   # logits + transposed (f32)
    return io + w + inter


def _choose_batch_tile(B, S, F, D, Cp, sep, n_classes, vmem_budget):
    """Largest legal batch tile fitting the VMEM budget, preferring 4-16 steps.

    Legal tiles obey the (8,128) block constraint: Bt % 8 == 0 or Bt == B.
    """
    cands = [bt for bt in range(B, 0, -1)
             if B % bt == 0 and (bt % 8 == 0 or bt == B)]
    fits = [bt for bt in cands
            if _tile_vmem_bytes(bt, S, F, D, Cp, sep, n_classes) <= vmem_budget]
    if not fits:
        return cands[-1]            # smallest legal tile; may still be tight
    preferred = [bt for bt in fits if 4 <= B // bt <= 16]
    if preferred:
        return preferred[0]         # largest tile with 4..16 grid steps
    if B // fits[-1] < 4:
        return fits[-1]             # B too small for 4 steps: maximize steps
    return fits[0]                  # only >16-step tiles fit: take the largest


def tabpfn_forward(X, y, params, *, single_eval_pos,
                   only_return_standard_out=True, categorical_inds=None,
                   batch_tile=None):
    """ModelWrapper.forward: model(None, X, y, single_eval_pos=..., ...).

    X : (S, B, F) float, seq-first (TabPFN convention)
    y : (S, B)    int labels; only rows < single_eval_pos are used
    Returns logits of shape (S - single_eval_pos, B, C), seq-first.
    """
    # TODO(synk): categorical_inds has no effect in this synthetic model; a
    # real TabPFN routes those features to a separate categorical encoder.
    del categorical_inds

    S, B, F = X.shape
    D = params["wx"].shape[1]
    C = params["wo"].shape[1]
    # Guard against empty train/eval splits (softmax over an empty axis -> NaN).
    assert 0 < single_eval_pos < S, "need at least one train and one eval row"
    E = S - single_eval_pos
    scale = 1.0 / (D ** 0.5)

    # Pad the class dim to a lane-dense multiple of 128 (sliced back below).
    Cp = _round_up(C, 128)

    # VMEM-aware tiling: query the chip, raise the scoped limit to match.
    vmem_cap = _vmem_capacity_bytes()
    vmem_limit = max(32 * 1024 * 1024,
                     min(int(vmem_cap * 0.85), 128 * 1024 * 1024))
    vmem_budget = int(vmem_limit * 0.6)

    if batch_tile is None:
        Bt = _choose_batch_tile(B, S, F, D, Cp, single_eval_pos, C, vmem_budget)
    else:
        Bt = batch_tile
    assert B % Bt == 0 and (Bt % 8 == 0 or Bt == B)

    # bf16 MXU inputs, f32 accumulation / biases; wy stays f32 (VPU path).
    wx = params["wx"].astype(jnp.bfloat16)
    bx = params["bx"].astype(jnp.float32)
    wy = params["wy"].astype(jnp.float32)
    wo = jnp.zeros((D, Cp), jnp.bfloat16).at[:, :C].set(
        params["wo"].astype(jnp.bfloat16))
    bo = jnp.zeros((1, Cp), jnp.float32).at[:, :C].set(
        params["bo"].astype(jnp.float32))

    # X stays seq-first (no wrapper transpose/cast: done in-kernel); labels go
    # lane-dense as (B, S) int32 (tiny transpose, S*B*4 bytes).
    x_sf = X.astype(jnp.float32)                          # (S, B, F)
    y_bm = jnp.transpose(y.astype(jnp.int32), (1, 0))     # (B, S)

    kernel = functools.partial(_tabpfn_kernel, single_eval_pos, scale, C)

    logits_p = pl.pallas_call(
        kernel,
        out_shape=jax.ShapeDtypeStruct((E, B, Cp), jnp.float32),
        grid_spec=pltpu.PrefetchScalarGridSpec(
            num_scalar_prefetch=0,
            grid=(B // Bt,),
            in_specs=[
                pl.BlockSpec((S, Bt, F), lambda b: (0, b, 0)),   # X (f32, seq-first)
                pl.BlockSpec((Bt, S), lambda b: (b, 0)),         # y (i32, lane-dense)
                pl.BlockSpec((F, D), lambda b: (0, 0)),          # wx
                pl.BlockSpec((1, D), lambda b: (0, 0)),          # bx
                pl.BlockSpec((C, D), lambda b: (0, 0)),          # wy
                pl.BlockSpec((D, Cp), lambda b: (0, 0)),         # wo (padded)
                pl.BlockSpec((1, Cp), lambda b: (0, 0)),         # bo (padded)
            ],
            out_specs=pl.BlockSpec((E, Bt, Cp), lambda b: (0, b, 0)),
        ),
        compiler_params=pltpu.CompilerParams(
            dimension_semantics=("parallel",),
            vmem_limit_bytes=vmem_limit),
    )(x_sf, y_bm, wx, bx, wy, wo, bo)

    # Already seq-first; only strip the class padding.
    logits = logits_p[:, :, :C]                            # (E, B, C)

    if only_return_standard_out:
        return logits
    return {"standard": logits}


def make_params(num_features, d_model, n_classes, key):
    """Deterministic synthetic 'checkpoint' for the wrapped model."""
    k1, k2, k3 = jax.random.split(key, 3)
    return {
        "wx": (jax.random.normal(k1, (num_features, d_model), jnp.float32)
               * (1.0 / num_features ** 0.5)),
        "bx": jnp.zeros((1, d_model), jnp.float32),
        "wy": (jax.random.normal(k2, (n_classes, d_model), jnp.float32)
               * (1.0 / n_classes ** 0.5)),
        "wo": (jax.random.normal(k3, (d_model, n_classes), jnp.float32)
               * (1.0 / d_model ** 0.5)),
        "bo": jnp.zeros((1, n_classes), jnp.float32),
    }


if __name__ == "__main__":
    # Small shapes consistent with the TabPFN-style forward:
    #   S=16 rows total, single_eval_pos=8 -> 8 train / 8 eval rows,
    #   B=2 datasets in the batch, F=4 features, C=2 classes, D=32 hidden.
    S, B, F, C, D = 16, 2, 4, 2, 32
    single_eval_pos = 8   # multiple of 8 -> sublane-aligned train/eval split

    key = jax.random.PRNGKey(0)
    kx, ky, kp = jax.random.split(key, 3)

    X = jax.random.normal(kx, (S, B, F), jnp.float32)
    y = jax.random.randint(ky, (S, B), 0, C, dtype=jnp.int32)
    params = make_params(F, D, C, kp)

    out = tabpfn_forward(
        X, y, params,
        single_eval_pos=single_eval_pos,
        only_return_standard_out=True,
        categorical_inds=[[] for _ in range(B)],
    )
    out = jax.block_until_ready(out)
    assert out.shape == (S - single_eval_pos, B, C), out.shape
    assert bool(jnp.all(jnp.isfinite(out)))
    print("KERNEL_OK")
</pallas_src>

<mosaic_0001>
module attributes {stable_mosaic.version = 11 : i64} {
  func.func @_tabpfn_kernel(%arg0: i32, %arg1: memref<16x2x4xf32, #tpu.memory_space<vmem>>, %arg2: memref<2x16xi32, #tpu.memory_space<vmem>>, %arg3: memref<4x32xbf16, #tpu.memory_space<vmem>>, %arg4: memref<1x32xf32, #tpu.memory_space<vmem>>, %arg5: memref<2x32xf32, #tpu.memory_space<vmem>>, %arg6: memref<32x128xbf16, #tpu.memory_space<vmem>>, %arg7: memref<1x128xf32, #tpu.memory_space<vmem>>, %arg8: memref<8x2x128xf32, #tpu.memory_space<vmem>>) attributes {dimension_semantics = [#tpu.dimension_semantics<parallel>], iteration_bounds = array<i64: 1>, scalar_prefetch = 0 : i64, scratch_operands = 0 : i64, tpu.core_type = #tpu.core_type<tc>, window_params = [{transform_indices = @transform_0, window_bounds = array<i64: 16, 2, 4>}, {transform_indices = @transform_1, window_bounds = array<i64: 2, 16>}, {pipeline_mode = #tpu.pipeline_mode<synchronous>, transform_indices = @transform_2, window_bounds = array<i64: 4, 32>}, {pipeline_mode = #tpu.pipeline_mode<synchronous>, transform_indices = @transform_3, window_bounds = array<i64: 1, 32>}, {pipeline_mode = #tpu.pipeline_mode<synchronous>, transform_indices = @transform_4, window_bounds = array<i64: 2, 32>}, {pipeline_mode = #tpu.pipeline_mode<synchronous>, transform_indices = @transform_5, window_bounds = array<i64: 32, 128>}, {pipeline_mode = #tpu.pipeline_mode<synchronous>, transform_indices = @transform_6, window_bounds = array<i64: 1, 128>}, {transform_indices = @transform_7, window_bounds = array<i64: 8, 2, 128>}]} {
    %c0 = arith.constant 0 : index
    %c0_0 = arith.constant 0 : index
    %c0_1 = arith.constant 0 : index
    %0 = vector.load %arg1[%c0, %c0_0, %c0_1] : memref<16x2x4xf32, #tpu.memory_space<vmem>>, vector<16x2x4xf32>
    %1 = tpu.transpose %0, [1, 0, 2] : vector<16x2x4xf32> -> vector<2x16x4xf32>
    %2 = vector.shape_cast %1 : vector<2x16x4xf32> to vector<32x4xf32>
    %3 = arith.truncf %2 : vector<32x4xf32> to vector<32x4xbf16>
    %c0_2 = arith.constant 0 : index
    %c0_3 = arith.constant 0 : index
    %4 = vector.load %arg3[%c0_2, %c0_3] : memref<4x32xbf16, #tpu.memory_space<vmem>>, vector<4x32xbf16>
    %cst = arith.constant dense<0.000000e+00> : vector<32x32xf32>
    %5 = tpu.matmul %3, %4, %cst {dimension_numbers = #tpu.dot_dimension_numbers<[1], [0], [0], [1], [0, 0, 1, 1], [], []>} : vector<32x4xbf16>, vector<4x32xbf16>, vector<32x32xf32> -> vector<32x32xf32>
    %c0_4 = arith.constant 0 : index
    %c0_5 = arith.constant 0 : index
    %6 = vector.load %arg4[%c0_4, %c0_5] : memref<1x32xf32, #tpu.memory_space<vmem>>, vector<1x32xf32>
    %7 = vector.broadcast %6 : vector<1x32xf32> to vector<32x32xf32>
    %8 = arith.addf %5, %7 : vector<32x32xf32>
    %9 = vector.shape_cast %8 : vector<32x32xf32> to vector<2x16x32xf32>
    %10 = vector.extract_strided_slice %9 {offsets = [0, 0, 0], sizes = [2, 8, 32], strides = [1, 1, 1]} : vector<2x16x32xf32> to vector<2x8x32xf32>
    %c0_6 = arith.constant 0 : index
    %c0_7 = arith.constant 0 : index
    %11 = vector.load %arg2[%c0_6, %c0_7] : memref<2x16xi32, #tpu.memory_space<vmem>>, vector<2x16xi32>
    %12 = vector.extract_strided_slice %11 {offsets = [0, 0], sizes = [2, 8], strides = [1, 1]} : vector<2x16xi32> to vector<2x8xi32>
    %c0_8 = arith.constant 0 : index
    %c0_9 = arith.constant 0 : index
    %13 = vector.load %arg5[%c0_8, %c0_9] : memref<2x32xf32, #tpu.memory_space<vmem>>, vector<2x32xf32>
    %c0_i32 = arith.constant 0 : i32
    %14 = vector.broadcast %c0_i32 : i32 to vector<2x8xi32>
    %15 = arith.cmpi eq, %12, %14 : vector<2x8xi32>
    %16 = arith.extui %15 : vector<2x8xi1> to vector<2x8xi32>
    %17 = arith.sitofp %16 : vector<2x8xi32> to vector<2x8xf32>
    %18 = vector.shape_cast %17 : vector<2x8xf32> to vector<2x8x1xf32>
    %19 = vector.extract_strided_slice %13 {offsets = [0, 0], sizes = [1, 32], strides = [1, 1]} : vector<2x32xf32> to vector<1x32xf32>
    %20 = vector.shape_cast %19 : vector<1x32xf32> to vector<1x1x32xf32>
    %21 = vector.broadcast %18 : vector<2x8x1xf32> to vector<2x8x32xf32>
    %22 = vector.broadcast %20 : vector<1x1x32xf32> to vector<2x8x32xf32>
    %23 = arith.mulf %21, %22 : vector<2x8x32xf32>
    %24 = arith.addf %10, %23 : vector<2x8x32xf32>
    %c1_i32 = arith.constant 1 : i32
    %25 = vector.broadcast %c1_i32 : i32 to vector<2x8xi32>
    %26 = arith.cmpi eq, %12, %25 : vector<2x8xi32>
    %27 = arith.extui %26 : vector<2x8xi1> to vector<2x8xi32>
    %28 = arith.sitofp %27 : vector<2x8xi32> to vector<2x8xf32>
    %29 = vector.shape_cast %28 : vector<2x8xf32> to vector<2x8x1xf32>
    %30 = vector.extract_strided_slice %13 {offsets = [1, 0], sizes = [1, 32], strides = [1, 1]} : vector<2x32xf32> to vector<1x32xf32>
    %31 = vector.shape_cast %30 : vector<1x32xf32> to vector<1x1x32xf32>
    %32 = vector.broadcast %29 : vector<2x8x1xf32> to vector<2x8x32xf32>
    %33 = vector.broadcast %31 : vector<1x1x32xf32> to vector<2x8x32xf32>
    %34 = arith.mulf %32, %33 : vector<2x8x32xf32>
    %35 = arith.addf %24, %34 : vector<2x8x32xf32>
    %36 = arith.truncf %35 : vector<2x8x32xf32> to vector<2x8x32xbf16>
    %37 = vector.extract_strided_slice %9 {offsets = [0, 8, 0], sizes = [2, 8, 32], strides = [1, 1, 1]} : vector<2x16x32xf32> to vector<2x8x32xf32>
    %cst_10 = arith.constant 0.176776692 : f32
    %38 = vector.broadcast %cst_10 : f32 to vector<2x8x32xf32>
    %39 = arith.mulf %37, %38 : vector<2x8x32xf32>
    %40 = arith.truncf %39 : vector<2x8x32xf32> to vector<2x8x32xbf16>
    "tpu.trace_start"() <{level = 10 : i32, message = "bed,btd->bet"}> : () -> ()
    %cst_11 = arith.constant dense<0.000000e+00> : vector<2x8x8xf32>
    %41 = tpu.matmul %40, %36, %cst_11 {dimension_numbers = #tpu.dot_dimension_numbers<[2], [2], [1], [1], [0, 0, 0, 1, 1, 1], [0], [0]>} : vector<2x8x32xbf16>, vector<2x8x32xbf16>, vector<2x8x8xf32> -> vector<2x8x8xf32>
    "tpu.trace_stop"() : () -> ()
    %cst_12 = arith.constant dense<0xFF800000> : vector<2x8xf32>
    %42 = vector.multi_reduction <maximumf>, %41, %cst_12 [2] : vector<2x8x8xf32> to vector<2x8xf32>
    %43 = vector.shape_cast %42 : vector<2x8xf32> to vector<2x8x1xf32>
    %44 = vector.broadcast %43 : vector<2x8x1xf32> to vector<2x8x8xf32>
    %45 = arith.subf %41, %44 : vector<2x8x8xf32>
    %46 = math.exp %45 : vector<2x8x8xf32>
    %cst_13 = arith.constant dense<0.000000e+00> : vector<2x8xf32>
    %47 = vector.multi_reduction <add>, %46, %cst_13 [2] : vector<2x8x8xf32> to vector<2x8xf32>
    %48 = vector.shape_cast %47 : vector<2x8xf32> to vector<2x8x1xf32>
    %49 = tpu.reciprocal %48 {approx = true} : vector<2x8x1xf32> -> vector<2x8x1xf32>
    %50 = vector.broadcast %49 : vector<2x8x1xf32> to vector<2x8x8xf32>
    %51 = arith.mulf %46, %50 : vector<2x8x8xf32>
    %52 = arith.truncf %51 : vector<2x8x8xf32> to vector<2x8x8xbf16>
    "tpu.trace_start"() <{level = 10 : i32, message = "bet,btd->bed"}> : () -> ()
    %cst_14 = arith.constant dense<0.000000e+00> : vector<2x8x32xf32>
    %53 = tpu.matmul %52, %36, %cst_14 {dimension_numbers = #tpu.dot_dimension_numbers<[2], [1], [1], [2], [0, 0, 0, 1, 1, 2], [0], [0]>} : vector<2x8x8xbf16>, vector<2x8x32xbf16>, vector<2x8x32xf32> -> vector<2x8x32xf32>
    "tpu.trace_stop"() : () -> ()
    %54 = vector.shape_cast %53 : vector<2x8x32xf32> to vector<16x32xf32>
    %55 = arith.truncf %54 : vector<16x32xf32> to vector<16x32xbf16>
    %c0_15 = arith.constant 0 : index
    %c0_16 = arith.constant 0 : index
    %56 = vector.load %arg6[%c0_15, %c0_16] : memref<32x128xbf16, #tpu.memory_space<vmem>>, vector<32x128xbf16>
    %cst_17 = arith.constant dense<0.000000e+00> : vector<16x128xf32>
    %57 = tpu.matmul %55, %56, %cst_17 {dimension_numbers = #tpu.dot_dimension_numbers<[1], [0], [0], [1], [0, 0, 1, 1], [], []>} : vector<16x32xbf16>, vector<32x128xbf16>, vector<16x128xf32> -> vector<16x128xf32>
    %c0_18 = arith.constant 0 : index
    %c0_19 = arith.constant 0 : index
    %58 = vector.load %arg7[%c0_18, %c0_19] : memref<1x128xf32, #tpu.memory_space<vmem>>, vector<1x128xf32>
    %59 = vector.broadcast %58 : vector<1x128xf32> to vector<16x128xf32>
    %60 = arith.addf %57, %59 : vector<16x128xf32>
    %61 = vector.shape_cast %60 : vector<16x128xf32> to vector<2x8x128xf32>
    %62 = tpu.transpose %61, [1, 0, 2] : vector<2x8x128xf32> -> vector<8x2x128xf32>
    %c0_20 = arith.constant 0 : index
    %c0_21 = arith.constant 0 : index
    %c0_22 = arith.constant 0 : index
    %63 = vector.load %arg8[%c0_20, %c0_21, %c0_22] : memref<8x2x128xf32, #tpu.memory_space<vmem>>, vector<8x2x128xf32>
    tpu.vector_store %arg8[%c0_20, %c0_21, %c0_22], %62 {strides = array<i32>} : memref<8x2x128xf32, #tpu.memory_space<vmem>>, vector<8x2x128xf32>,
    return
  }
  func.func @transform_0(%arg0: i32) -> (i32, i32, i32) {
    %c0_i32 = arith.constant 0 : i32
    %c0_i32_0 = arith.constant 0 : i32
    %c0_i32_1 = arith.constant 0 : i32
    return %c0_i32, %arg0, %c0_i32_0 : i32, i32, i32
  }
  func.func @transform_1(%arg0: i32) -> (i32, i32) {
    %c0_i32 = arith.constant 0 : i32
    %c0_i32_0 = arith.constant 0 : i32
    return %arg0, %c0_i32 : i32, i32
  }
  func.func @transform_2(%arg0: i32) -> (i32, i32) {
    %c0_i32 = arith.constant 0 : i32
    %c0_i32_0 = arith.constant 0 : i32
    %c0_i32_1 = arith.constant 0 : i32
    return %c0_i32, %c0_i32_0 : i32, i32
  }
  func.func @transform_3(%arg0: i32) -> (i32, i32) {
    %c0_i32 = arith.constant 0 : i32
    %c0_i32_0 = arith.constant 0 : i32
    %c0_i32_1 = arith.constant 0 : i32
    return %c0_i32, %c0_i32_0 : i32, i32
  }
  func.func @transform_4(%arg0: i32) -> (i32, i32) {
    %c0_i32 = arith.constant 0 : i32
    %c0_i32_0 = arith.constant 0 : i32
    %c0_i32_1 = arith.constant 0 : i32
    return %c0_i32, %c0_i32_0 : i32, i32
  }
  func.func @transform_5(%arg0: i32) -> (i32, i32) {
    %c0_i32 = arith.constant 0 : i32
    %c0_i32_0 = arith.constant 0 : i32
    %c0_i32_1 = arith.constant 0 : i32
    return %c0_i32, %c0_i32_0 : i32, i32
  }
  func.func @transform_6(%arg0: i32) -> (i32, i32) {
    %c0_i32 = arith.constant 0 : i32
    %c0_i32_0 = arith.constant 0 : i32
    %c0_i32_1 = arith.constant 0 : i32
    return %c0_i32, %c0_i32_0 : i32, i32
  }
  func.func @transform_7(%arg0: i32) -> (i32, i32, i32) {
    %c0_i32 = arith.constant 0 : i32
    %c0_i32_0 = arith.constant 0 : i32
    %c0_i32_1 = arith.constant 0 : i32
    return %c0_i32, %arg0, %c0_i32_0 : i32, i32, i32
  }
}

</mosaic_0001>

<bundles_post_ra>
// kernel: tpu_custom_call.1
= control target key start
LH: loop header
LB: loop body
LE: loop exit
PB: predicated region body
PF: predicated region fallthrough
CT: control target
= control target key end

     0   :  { %vm139_vm0 = vcmask 1041408   ;;  %v168_v1 = vlaneseq  ;;  %vm45_vm1 = vcmask 1047556   ;;  %v507_v20 = vmov 1983009808   ;;  %s688_s0 = inlined_call_operand.vmem [shape: f32[16,2,4], index: 0, kind: input, shape index: {}]   ;;  %s689_s1 = inlined_call_operand.vmem [shape: s32[2,16], index: 1, kind: input, shape index: {}]   ;;  %s690_s2 = inlined_call_operand.vmem [shape: bf16[4,32], index: 2, kind: input, shape index: {}]   ;;  %s691_s3 = inlined_call_operand.vmem [shape: f32[1,32], index: 3, kind: input, shape index: {}]   ;;  %s692_s4 = inlined_call_operand.vmem [shape: f32[2,32], index: 4, kind: input, shape index: {}]   ;;  %s693_s5 = inlined_call_operand.vmem [shape: bf16[32,128], index: 5, kind: input, shape index: {}]   ;;  %s694_s6 = inlined_call_operand.vmem [shape: f32[1,128], index: 6, kind: input, shape index: {}]   ;;  %s695_s7 = inlined_call_operand.hbm [shape: f32[8,2,128], index: 7, kind: output, shape index: {}]  }
   0x1   :  { %v127_v0 = vld [vmem:[%s690_s2] sm:$0x3]  ;;  %v30_v3 = vld [vmem:[%s688_s0 + $0x4] sm:$0x3]  ;;  %v31_v7 = vld [vmem:[%s688_s0 + $0x6] sm:$0x3]  ;;  %v48_v21 = vunpack.c.l.s4 %v507_v20 }
   0x2   :  { %v141_v2 = vsel %vm139_vm0, %v127_v0, 0  ;;  %v169_v4 = vshrl.u32 %v168_v1, 7  ;;  %v44_v5 = vrot.slane %v30_v3, 4  ;;  %v28_v6 = vld [vmem:[%s688_s0] sm:$0x3]  ;;  %v51_v22 = vrot.slane %v31_v7, 4 }
   0x3   :  { %150 = vmatpush.bf16.msra.mxu0 %v141_v2  ;;  %v29_v8 = vld [vmem:[%s688_s0 + $0x2] sm:$0x3]  ;;  %v32_v9 = vld [vmem:[%s688_s0 + $0x8] sm:$0x3]  ;;  %v34_v10 = vld [vmem:[%s688_s0 + $0xc] sm:$0x3]  ;;  %v599_v28 = vunpack.c.0.s8 %v48_v21 }
   0x4   :  { %460 = vset.pattern.permute.xlu0 %v169_v4  ;;  %v35_v11 = vld [vmem:[%s688_s0 + $0xe] sm:$0x3]  ;;  %v33_v12 = vld [vmem:[%s688_s0 + $0xa] sm:$0x3]  ;;  %v38_v13 = vld [vmem:[%s688_s0 + $0x14] sm:$0x3]  ;;  %v46_v18 = vsel %vm45_vm1, %v44_v5, %v28_v6  ;;  %v52_v29 = vsel %vm45_vm1, %v51_v22, %v29_v8 }
   0x5   :  { %v39_v14 = vld [vmem:[%s688_s0 + $0x16] sm:$0x3]  ;;  %v36_v15 = vld [vmem:[%s688_s0 + $0x10] sm:$0x3]  ;;  %v37_v16 = vld [vmem:[%s688_s0 + $0x12] sm:$0x3] }
   0x6   :  { %v42_v17 = vld [vmem:[%s688_s0 + $0x1c] sm:$0x3]  ;;  %v40_v19 = vld [vmem:[%s688_s0 + $0x18] sm:$0x3]  ;;  %v57_v23 = vrot.slane %v34_v10, 4  ;;  %v63_v24 = vrot.slane %v35_v11, 4 }
   0x7   :  { %v85_v25 = vrot.slane %v38_v13, 4  ;;  %v91_v26 = vrot.slane %v39_v14, 4  ;;  %v97_v27 = vrot.slane %v42_v17, 4 }
   0x8   :  { %v58_v30 = vsel %vm45_vm1, %v57_v23, %v32_v9  ;;  %v64_v31 = vsel %vm45_vm1, %v63_v24, %v33_v12 }
   0x9   :  { %12 = vsyncpa [#allocation3], 0  ;;  %v43_v32 = vld [vmem:[%s688_s0 + $0x1e] sm:$0x3]  ;;  %v508_v33 = vmov 1934713408   ;;  %v92_v35 = vsel %vm45_vm1, %v91_v26, %v37_v16  ;;  %v56_v37 = vperm.slane %v52_v29, %v599_v28  ;;  %v62_v38 = vperm.slane %v58_v30, %v599_v28 }
   0xa   :  { %v72_v34 = vunpack.c.l.s4 %v508_v33  ;;  %v162_v36 = vld [vmem:[%s689_s1] sm:$0x3]  ;;  %v68_v39 = vperm.slane %v64_v31, %v599_v28  ;;  %v86_v40 = vsel %vm45_vm1, %v85_v25, %v36_v15  ;;  %v41_v41 = vld [vmem:[%s688_s0 + $0x1a] sm:$0x3]  ;;  %v50_v42 = vperm.slane %v46_v18, %v599_v28  ;;  %s419_s20 = sshll.u32 %s695_s7, 4  ;;  %s511_s21 = smov 32   ;;  %s420_s20 = int_to_ptr.hbm [resolvable:$true] %s419_s20 }
   0xb   :  { %v96_v44 = vperm.slane %v92_v35, %v599_v28  ;;  %v98_v45 = vsel %vm45_vm1, %v97_v27, %v40_v19  ;;  %v69_v46 = vrot.slane %v56_v37, 4  ;;  %v103_v48 = vrot.slane %v43_v32, 4  ;;  %v163_v18 = vld [vmem:[%s692_s4] sm:$0x3]  ;;  %s512_s22 = smov 2  }
   0xc   :  { %v619_v43 = vunpack.c.0.s8 %v72_v34  ;;  %v75_v47 = vrot.slane %v68_v39, 4  ;;  %vm164_vm2 = vcmp.eq.s32.totalorder %v162_v36, 0  ;;  %v90_v49 = vperm.slane %v86_v40, %v599_v28  ;;  %v471_v24 = vld [vmem:[%s691_s3] ss:$0 sm:$0xff] }
   0xd   :  { %v109_v50 = vrot.slane %v96_v44, 4  ;;  %vm186_vm3 = vcmp.eq.s32.totalorder %v162_v36, 1  ;;  %v104_v52 = vsel %vm45_vm1, %v103_v48, %v41_v41  ;;  %v509_v53 = vmov 0.0  }
   0xe   :  { %v76_v51 = vsel %vm45_vm1, %v75_v47, %v62_v38  ;;  %v433_v54 = vsel %vm164_vm2, 1.0, %v509_v53  ;;  %v70_v55 = vsel %vm45_vm1, %v69_v46, %v50_v42  ;;  %v102_v57 = vperm.slane %v98_v45, %v599_v28 }
   0xf   :  { %v80_v56 = vperm.slane %v76_v51, %v619_v43  ;;  %v108_v58 = vperm.slane %v104_v52, %v599_v28  ;;  %v167_v59 = vperm.slane %v433_v54, 0  ;;  %v434_v60 = vsel %vm186_vm3, 1.0, %v509_v53 }
  0x10   :  { %v110_v61 = vsel %vm45_vm1, %v109_v50, %v90_v49  ;;  %v189_v63 = vperm.slane %v434_v60, 0  ;;  %v74_v0 = vperm.slane %v70_v55, %v619_v43  ;;  %v174_v6 = vperm.slane %v433_v54, 1 }
  0x11   :  { %v115_v62 = vrot.slane %v108_v58, 4  ;;  %v81_v1 = vrot.slane %v80_v56, 4  ;;  %v114_v4 = vperm.slane %v110_v61, %v619_v43  ;;  %v196_v7 = vperm.slane %v434_v60, 1 }
  0x12   :  { %v461_v3 = vpack.i.bf16 %v189_v63, %v167_v59  ;;  %vm132_vm4 = vcmask 31744   ;;  %v83_v13 = vrot.slane %v74_v0, 4  ;;  %v181_v20 = vperm.slane %v163_v18, 0 }
  0x13   :  { %v116_v2 = vsel %vm45_vm1, %v115_v62, %v102_v57  ;;  %v82_v8 = vsel %vm45_vm1, %v81_v1, %v74_v0  ;;  %v466_v12 = vpack.i.bf16 %v196_v7, %v174_v6  ;;  %v123_v14 = vrot.slane %v114_v4, 4 }
  0x14   :  { %v120_v5 = vperm.slane %v116_v2, %v619_v43  ;;  %462 = vperm.xlu0 %460, %v461_v3   ;;  %v84_v15 = vsel %vm45_vm1, %v80_v56, %v83_v13  ;;  %v203_v22 = vperm.slane %v163_v18, 1  ;;  %vm214_vm5 = vcmask 261120  }
  0x15   :  { %vm281_vm6 = vcmask 1043456   ;;  %vm253_vm7 = vcmask 64512  }
  0x16   :  { %v121_v9 = vrot.slane %v120_v5, 4  ;;  %v124_v16 = vsel %vm45_vm1, %v120_v5, %v123_v14 }
  0x17   :  { %v126_v17 = vpack.c.bf16 %v124_v16, %v84_v15  ;;  %v453_v16 = vld [vmem:[%s693_s5 + $0x8] sm:$0xff] }
  0x18   :  { %v122_v10 = vsel %vm45_vm1, %v121_v9, %v114_v4 }
  0x19   :  { %v125_v11 = vpack.c.bf16 %v122_v10, %v82_v8 }
  0x1b   :  { %431 = vmatmul.msk.bf16.vlgmr.msra.gmra.mxu0 %vm132_vm4, %v125_v11 }
  0x1c   :  { %467 = vperm.xlu0 %460, %v466_v12  }
  0x2b   :  { %432 = vmatmul.msk.bf16.gmra.mxu0 %vm132_vm4, %v126_v17  ;;  %v452_v17 = vld [vmem:[%s693_s5] sm:$0xff]  ;;  %s510_s5 = smov [#allocation2]  }
  0x86   :  { %v463_v19 = vpop.permute.xlu0 %462 }
  0x87   :  { %v464_v21 = vunpack.i.l.bf16 %v463_v19  ;;  %v465_v23 = vunpack.i.h.bf16 %v463_v19 }
  0x89   :  { %v182_v25 = vmul.f32 %v464_v21, %v181_v20  ;;  %v204_v27 = vmul.f32 %v465_v23, %v203_v22  ;;  %v472_v23 = vld [vmem:[%s694_s6] ss:$0 sm:$0xff]  ;;  %s417_s6 = sshll.u32 %s510_s5, 4  ;;  %s418_s6 = int_to_ptr.vmem [resolvable:$true] %s417_s6 }
  0x8e   :  { %v468_v37 = vpop.permute.xlu0 %467 }
  0x8f   :  { %v469_v39 = vunpack.i.l.bf16 %v468_v37  ;;  %v470_v40 = vunpack.i.h.bf16 %v468_v37 }
  0x91   :  { %v183_v44 = vmul.f32 %v469_v39, %v181_v20  ;;  %v205_v46 = vmul.f32 %v470_v40, %v203_v22 }
  0x98   :  { %v152_v26 = vpop.f32.mrf.mxu0 }
  0x99   :  { %v153_v29 = vadd.f32 %v471_v24, %v152_v26 }
  0x9b   :  { %v184_v30 = vadd.f32 %v182_v25, %v153_v29 }
  0x9d   :  { %v206_v31 = vadd.f32 %v204_v27, %v184_v30 }
  0x9f   :  { %v208_v32 = vpack.c.bf16 %v206_v31, %v206_v31 }
  0xa0   :  { %v154_v33 = vpop.f32.mrf.mxu0 }
  0xa1   :  { %v155_v34 = vadd.f32 %v471_v24, %v154_v33  ;;  %v219_v35 = vsel %vm214_vm5, %v208_v32, 0  ;;  %v282_v36 = vsel %vm281_vm6, %v208_v32, 0 }
  0xa2   :  { %228 = vmatpush.bf16.xpose.msra.mxu1 %v219_v35  ;;  %291 = vmatpush.bf16.msra.mxu3 %v282_v36 }
  0xa3   :  { %v210_v38 = vmul.f32 0.17677669, %v155_v34 }
  0xa5   :  { %v212_v41 = vpack.c.bf16 %v210_v38, %v210_v38 }
  0xa8   :  { %v157_v42 = vpop.f32.mrf.mxu0 }
  0xa9   :  { %v158_v45 = vadd.f32 %v471_v24, %v157_v42  ;;  %435 = vmatmul.msk.bf16.vlgmr.msra.gmra.mxu1 %vm214_vm5, %v212_v41 }
  0xaa   :  { %345 = vmatpush.bf16.msrb.mxu1 %v453_v16 }
  0xab   :  { %v185_v47 = vadd.f32 %v183_v44, %v158_v45 }
  0xad   :  { %v207_v48 = vadd.f32 %v205_v46, %v185_v47 }
  0xae   :  { %346 = vmatpush.bf16.msrb.mxu1 %v452_v17 }
  0xaf   :  { %v209_v49 = vpack.c.bf16 %v207_v48, %v207_v48 }
  0xb0   :  { %v159_v50 = vpop.f32.mrf.mxu0 }
  0xb1   :  { %v160_v51 = vadd.f32 %v471_v24, %v159_v50  ;;  %v238_v52 = vsel %vm214_vm5, %v209_v49, 0  ;;  %v300_v53 = vsel %vm281_vm6, %v209_v49, 0 }
  0xb2   :  { %247 = vmatpush.bf16.xpose.msra.mxu2 %v238_v52  ;;  %309 = vmatpush.bf16.msrb.mxu3 %v300_v53 }
  0xb3   :  { %v211_v54 = vmul.f32 0.17677669, %v160_v51 }
  0xb5   :  { %v213_v55 = vpack.c.bf16 %v211_v54, %v211_v54 }
  0xb9   :  { %436 = vmatmul.msk.bf16.vlgmr.msra.gmra.mxu2 %vm214_vm5, %v213_v55 }
 0x126   :  { %v230_v56 = vpop.f32.mrf.mxu1 }
 0x127   :  { %v254_v57 = vsel %vm253_vm7, %v230_v56, -inf }
 0x128   :  { %255 = vmax.xlane.f32.xlu1 %v254_v57 }
 0x12e   :  { %v232_v58 = vpop.f32.mrf.mxu1 }
 0x13c   :  { %v249_v59 = vpop.f32.mrf.mxu2 }
 0x13d   :  { %v257_v60 = vsel %vm253_vm7, %v249_v59, -inf }
 0x13e   :  { %258 = vmax.xlane.f32.xlu1 %v257_v60 }
 0x144   :  { %v251_v61 = vpop.f32.mrf.mxu2 }
 0x19b   :  { %v256_v62 = vpop.xlane.xlu1 %255 }
 0x19c   :  { %v260_v63 = vsub.f32 %v230_v56, %v256_v62 }
 0x19e   :  { %v262_v0 = vmul.f32 1.442695, %v260_v63 }
 0x1a0   :  { %473 = vpow2.f32 %v262_v0 }
 0x1a6   :  { %v474_v1 = vpop.eup %473 }
 0x1a7   :  { %v266_v2 = vsel %vm253_vm7, %v474_v1, 0.0 }
 0x1a8   :  { %267 = vadd.xlane.f32.xlu2 %v266_v2 }
 0x1b1   :  { %v259_v3 = vpop.xlane.xlu1 %258 }
 0x1b2   :  { %v261_v4 = vsub.f32 %v249_v59, %v259_v3 }
 0x1b4   :  { %v264_v5 = vmul.f32 1.442695, %v261_v4 }
 0x1b6   :  { %475 = vpow2.f32 %v264_v5 }
 0x1bc   :  { %v476_v6 = vpop.eup %475 }
 0x1bd   :  { %v269_v7 = vsel %vm253_vm7, %v476_v6, 0.0 }
 0x1be   :  { %270 = vadd.xlane.f32.xlu2 %v269_v7 }
 0x21b   :  { %v268_v8 = vpop.xlane.xlu2 %267 }
 0x21c   :  { %477 = vrcp.f32 %v268_v8 }
 0x222   :  { %v478_v9 = vpop.eup %477 }
 0x223   :  { %v274_v10 = vmul.f32 %v478_v9, %v474_v1 }
 0x225   :  { %v276_v11 = vpack.c.bf16 %v274_v10, %v274_v10 }
 0x227   :  { %437 = vmatmul.msk.bf16.vlgmr.msra.gmra.mxu3 %vm253_vm7, %v276_v11 }
 0x231   :  { %v271_v12 = vpop.xlane.xlu2 %270 }
 0x232   :  { %479 = vrcp.f32 %v271_v12 }
 0x238   :  { %v480_v13 = vpop.eup %479 }
 0x239   :  { %v275_v14 = vmul.f32 %v480_v13, %v476_v6 }
 0x23b   :  { %v277_v15 = vpack.c.bf16 %v275_v14, %v275_v14 }
 0x23d   :  { %438 = vmatmul.msk.bf16.vlgmr.msrb.gmra.mxu3 %vm253_vm7, %v277_v15 }
 0x2aa   :  { %v293_v18 = vpop.f32.mrf.mxu3 }
 0x2b2   :  { %v295_v19 = vpop.f32.mrf.mxu3 }
 0x2c0   :  { %v311_v20 = vpop.f32.mrf.mxu3 }
 0x2c1   :  { %v315_v21 = vpack.c.bf16 %v311_v20, %v293_v18 }
 0x2c3   :  { %447 = vmatmul.msk.bf16.vlgmr.msrb.gmra.mxu1 %vm214_vm5, %v315_v21 }
 0x2c8   :  { %v313_v22 = vpop.f32.mrf.mxu3 }
 0x340   :  { %v348_v24 = vpop.f32.mrf.mxu1 }
 0x341   :  { %v349_v25 = vadd.f32 %v472_v23, %v348_v24 }
 0x343   :  { %v353_v26 = vrot.slane %v349_v25, 4  ;;  %v358_v29 = vperm.slane %v349_v25, %v599_v28 }
 0x345   :  { %v354_v27 = vsel %vm45_vm1, 0.0, %v353_v26  ;;  %v375_v33 = vrot.slane %v358_v29, 4 }
 0x346   :  { %v362_v32 = vperm.slane %v354_v27, %v599_v28 }
 0x348   :  { %v350_v30 = vpop.f32.mrf.mxu1  ;;  %v387_v39 = vrot.slane %v362_v32, 4 }
 0x349   :  { %v351_v31 = vadd.f32 %v472_v23, %v350_v30 }
 0x34b   :  { %v363_v34 = vrot.slane %v351_v31, 4  ;;  %v368_v35 = vperm.slane %v351_v31, %v599_v28 }
 0x34d   :  { %v364_v36 = vsel %vm45_vm1, 0.0, %v363_v34  ;;  %v373_v37 = vrot.slane %v368_v35, 4  ;;  %v376_v38 = vsel %vm45_vm1, %v368_v35, %v375_v33 }
 0x34e   :  { %v372_v40 = vperm.slane %v364_v36, %v599_v28  ;;  %v384_v41 = vperm.slane %v376_v38, %v619_v43  ;;  %449 = vst.sshfl [vmem:[#allocation2 + $0x4] sm:$0x11 pattern:$0x73516240] %v376_v38 }
 0x34f   :  { %v374_v42 = vsel %vm45_vm1, %v373_v37, %v358_v29 }
 0x350   :  { %v380_v44 = vperm.slane %v374_v42, %v619_v43  ;;  %v385_v45 = vrot.slane %v372_v40, 4  ;;  %v388_v46 = vsel %vm45_vm1, %v372_v40, %v387_v39  ;;  %v399_v47 = vrot.slane %v384_v41, 4  ;;  %448 = vst.sshfl [vmem:[#allocation2] sm:$0x11 pattern:$0x73516240] %v374_v42 }
 0x351   :  { %v396_v48 = vperm.slane %v388_v46, %v619_v43  ;;  %451 = vst.sshfl [vmem:[#allocation2 + $0xc] sm:$0x11 pattern:$0x73516240] %v388_v46 }
 0x352   :  { %v386_v49 = vsel %vm45_vm1, %v385_v45, %v362_v32  ;;  %v397_v50 = vrot.slane %v380_v44, 4  ;;  %v400_v28 = vsel %vm45_vm1, 0.0, %v399_v47 }
 0x353   :  { %v392_v51 = vperm.slane %v386_v49, %v619_v43  ;;  %v403_v52 = vrot.slane %v396_v48, 4  ;;  %408 = vst [vmem:[#allocation2 + $0x6] sm:$0x3] %v400_v28 }
 0x354   :  { %v398_v53 = vsel %vm45_vm1, 0.0, %v397_v50  ;;  %450 = vst.sshfl [vmem:[#allocation2 + $0x8] sm:$0x11 pattern:$0x73516240] %v386_v49 }
 0x355   :  { %v401_v54 = vrot.slane %v392_v51, 4  ;;  %v404_v55 = vsel %vm45_vm1, 0.0, %v403_v52  ;;  %406 = vst [vmem:[#allocation2 + $0x2] sm:$0x3] %v398_v53 }
 0x356   :  { %412 = vst [vmem:[#allocation2 + $0xe] sm:$0x3] %v404_v55 }
 0x357   :  { %v402_v56 = vsel %vm45_vm1, 0.0, %v401_v54 }
 0x358   :  { %410 = vst [vmem:[#allocation2 + $0xa] sm:$0x3] %v402_v56 }
 0x359   :  { %425 = dma.vmem_to_hbm [thread:$0]  %s418_s6, 256, %s420_s20, [#allocation3], %s511_s21, %s511_s21, %s512_s22  }
 0x35a   :  { %505 = dma.done.wait [#allocation3], 256  }
 0x35b   :  { %506 = vsyncadd [#allocation3], 4294967040 }
 0x35c   :  { %430 = vsyncpa [#allocation3], 1 }

</bundles_post_ra>
